<compile_context>
chip_gen: v7x
topology: tpu7x:2x2x1
jax: 0.10.0
libtpu: 0.0.40
codegen_flags: <defaults>
</compile_context>

<pallas_src>
import jax
import jax.numpy as jnp
from jax import lax
from jax.experimental import pallas as pl
from jax.experimental.pallas import tpu as pltpu

D_IN, H1, H2, H3, D_OUT = 12, 128, 64, 32, 1


def climate_nn_kernel(x_ref, w1t_ref, b1r_ref, w2_ref, b2_ref,
                      w3_ref, b3_ref, w4c_ref, b4_ref, o_ref):
    """One batch tile: x (tb, 12) -> o (1, tb); feature-major after layer 1."""
    cdt = w1t_ref.dtype                        # MXU compute dtype (f32 or bf16)

    # ---- Layer 1 (batch-major): (tb,12) @ (12,128) -> (tb,128) --------------
    # x is cast per-tile in-kernel; it stays f32 in HBM (no wrapper cast pass).
    h = jnp.dot(x_ref[...].astype(cdt), w1t_ref[...],
                preferred_element_type=jnp.float32)
    h = jnp.maximum(h + b1r_ref[...], 0.0)     # (tb,128) f32, bias row (1,128)

    # ---- Layer 2: contract h's feature axis directly (no materialized h.T) --
    # (64,128) x (tb,128), contracting dim1 with dim1 -> (64, tb) feature-major.
    h2 = lax.dot_general(w2_ref[...], h.astype(cdt),
                         (((1,), (1,)), ((), ())),
                         preferred_element_type=jnp.float32)
    h2 = jnp.maximum(h2 + b2_ref[...], 0.0)    # bias col (64,1)

    # ---- Layer 3: (32,64) @ (64,tb) -> (32,tb) -------------------------------
    h3 = jnp.dot(w3_ref[...], h2.astype(cdt),
                 preferred_element_type=jnp.float32)
    h3 = jnp.maximum(h3 + b3_ref[...], 0.0)    # bias col (32,1)

    # ---- Layer 4 off the MXU: (32,1) * (32,tb) -> sublane reduce -> (1,tb) ---
    ot = jnp.sum(w4c_ref[...] * h3, axis=0, keepdims=True) + b4_ref[0, 0]

    o_ref[...] = ot.astype(o_ref.dtype)        # lane-dense (1, tb) store


def climate_nn_forward(x, params, *, tile_b=4096, use_bf16=False):
    """x: (B, 12) float32. params: PyTorch-layout weights. Returns (B, 1) f32."""
    B = x.shape[0]
    assert x.shape[1] == D_IN

    up128 = lambda v: ((v + 127) // 128) * 128
    cdiv = lambda a, b: -(-a // b)

    # Batch tile: multiple of 128 lanes, no larger than the (rounded) batch.
    tb = up128(max(128, min(tile_b, B)))
    nb = cdiv(B, tb)
    # v7x megacore: keep >= 2 grid steps whenever the batch is big enough to
    # split, so both TensorCores get work. (v5e/v6e have 1 TC; harmless there.)
    if nb < 2 and B > 128:
        tb = up128(cdiv(B, 2))
        nb = cdiv(B, tb)
    bp = nb * tb                               # output rounded up; NO jnp.pad of x
    grid = (nb,)

    cdt = jnp.bfloat16 if use_bf16 else jnp.float32

    # One-time host-side weight prep (tiny; stays VMEM-resident every step).
    w1t = params["w1"].T.astype(cdt)                        # (12, 128)
    w2 = params["w2"].astype(cdt)                           # (64, 128)
    w3 = params["w3"].astype(cdt)                           # (32, 64)
    b1r = params["b1"].reshape(1, H1).astype(jnp.float32)   # (1, 128)
    b2c = params["b2"].reshape(H2, 1).astype(jnp.float32)   # (64, 1)
    b3c = params["b3"].reshape(H3, 1).astype(jnp.float32)   # (32, 1)
    w4c = params["w4"].reshape(H3, 1).astype(jnp.float32)   # (32, 1) col (VPU)
    b4s = params["b4"].reshape(1, 1).astype(jnp.float32)    # scalar, SMEM

    resident = lambda shape: pl.BlockSpec(shape, lambda i: (0, 0))

    # VMEM budget: ~2.4 KiB per in-flight batch element (lane-padded x double
    # buffer + f32 h + feature-major activations + output). Clamp to 64 MiB so
    # the same setting is valid on v7x (64 MiB physical VMEM); floor of 32 MiB
    # lifts the v5e 16 MiB scoped default for large tiles.
    vmem_bytes = int(min(64 << 20, max(32 << 20, tb * 4 * 1024)))

    out_t = pl.pallas_call(
        climate_nn_kernel,
        out_shape=jax.ShapeDtypeStruct((1, bp), jnp.float32),
        grid=grid,
        in_specs=[
            pl.BlockSpec((tb, D_IN), lambda i: (i, 0)),     # x batch tile (ragged tail OK)
            resident((D_IN, H1)),                           # w1^T
            resident((1, H1)),                              # b1 row
            resident((H2, H1)),                             # w2 (out, in)
            resident((H2, 1)),                              # b2 col
            resident((H3, H2)),                             # w3
            resident((H3, 1)),                              # b3 col
            resident((H3, 1)),                              # w4 column (VPU layer 4)
            pl.BlockSpec(memory_space=pltpu.MemorySpace.SMEM),  # b4 scalar
        ],
        out_specs=pl.BlockSpec((1, tb), lambda i: (0, i)),  # lane-dense slab
        compiler_params=pltpu.CompilerParams(
            dimension_semantics=("parallel",),              # megacore on v7x
            vmem_limit_bytes=vmem_bytes,
        ),
    )(x, w1t, b1r, w2, b2c, w3, b3c, w4c, b4s)

    # (1, bp) lane-dense slab -> (B, 1); drop padded tail columns.
    return out_t[0, :B].reshape(B, 1)


def init_params(key):
    """PyTorch-layout params: w_i is (out_features, in_features), b_i is (out,).
    Mimics nn.Linear default init: U(-1/sqrt(fan_in), 1/sqrt(fan_in))."""
    dims = [(D_IN, H1), (H1, H2), (H2, H3), (H3, D_OUT)]
    params = {}
    for i, (fan_in, fan_out) in enumerate(dims, start=1):
        key, kw, kb = jax.random.split(key, 3)
        bound = 1.0 / (float(fan_in) ** 0.5)
        params[f"w{i}"] = jax.random.uniform(
            kw, (fan_out, fan_in), jnp.float32, minval=-bound, maxval=bound)
        params[f"b{i}"] = jax.random.uniform(
            kb, (fan_out,), jnp.float32, minval=-bound, maxval=bound)
    return params


def reference_forward(x, p):
    h = jnp.maximum(x @ p["w1"].T + p["b1"], 0.0)
    h = jnp.maximum(h @ p["w2"].T + p["b2"], 0.0)
    h = jnp.maximum(h @ p["w3"].T + p["b3"], 0.0)
    return h @ p["w4"].T + p["b4"]


if __name__ == "__main__":
    key = jax.random.PRNGKey(0)
    key, kx = jax.random.split(key)

    # Small demo shapes; B deliberately not a tile multiple to exercise the
    # ragged final block, and the >=2-grid-step cap (tile is auto-reduced).
    B = 300
    x = jax.random.normal(kx, (B, D_IN), dtype=jnp.float32)
    params = init_params(key)

    ref = reference_forward(x, params)

    # f32 path: matches the JAX reference tightly.
    out = climate_nn_forward(x, params, use_bf16=False)
    out = jax.block_until_ready(out)
    assert out.shape == (B, D_OUT)
    assert jnp.allclose(out, ref, atol=1e-4, rtol=1e-4), "f32 mismatch vs reference"

    # bf16 fast path: weights bf16-resident, x cast per-tile inside the kernel.
    out_bf16 = climate_nn_forward(x, params, use_bf16=True)
    out_bf16 = jax.block_until_ready(out_bf16)
    assert out_bf16.shape == (B, D_OUT)
    assert jnp.allclose(out_bf16, ref, atol=5e-2, rtol=5e-2), "bf16 mismatch vs reference"

    print("KERNEL_OK")
</pallas_src>

<mosaic_0001>
module attributes {stable_mosaic.version = 11 : i64} {
  func.func @climate_nn_kernel(%arg0: i32, %arg1: memref<256x12xf32, #tpu.memory_space<vmem>>, %arg2: memref<12x128xf32, #tpu.memory_space<vmem>>, %arg3: memref<1x128xf32, #tpu.memory_space<vmem>>, %arg4: memref<64x128xf32, #tpu.memory_space<vmem>>, %arg5: memref<64x1xf32, #tpu.memory_space<vmem>>, %arg6: memref<32x64xf32, #tpu.memory_space<vmem>>, %arg7: memref<32x1xf32, #tpu.memory_space<vmem>>, %arg8: memref<32x1xf32, #tpu.memory_space<vmem>>, %arg9: memref<1x1xf32, #tpu.memory_space<smem>>, %arg10: memref<1x256xf32, #tpu.memory_space<vmem>>) attributes {dimension_semantics = [#tpu.dimension_semantics<parallel>], iteration_bounds = array<i64: 2>, scalar_prefetch = 0 : i64, scratch_operands = 0 : i64, tpu.core_type = #tpu.core_type<tc>, window_params = [{transform_indices = @transform_0, window_bounds = array<i64: 256, 12>}, {pipeline_mode = #tpu.pipeline_mode<synchronous>, transform_indices = @transform_1, window_bounds = array<i64: 12, 128>}, {pipeline_mode = #tpu.pipeline_mode<synchronous>, transform_indices = @transform_2, window_bounds = array<i64: 1, 128>}, {pipeline_mode = #tpu.pipeline_mode<synchronous>, transform_indices = @transform_3, window_bounds = array<i64: 64, 128>}, {pipeline_mode = #tpu.pipeline_mode<synchronous>, transform_indices = @transform_4, window_bounds = array<i64: 64, 1>}, {pipeline_mode = #tpu.pipeline_mode<synchronous>, transform_indices = @transform_5, window_bounds = array<i64: 32, 64>}, {pipeline_mode = #tpu.pipeline_mode<synchronous>, transform_indices = @transform_6, window_bounds = array<i64: 32, 1>}, {pipeline_mode = #tpu.pipeline_mode<synchronous>, transform_indices = @transform_7, window_bounds = array<i64: 32, 1>}, {transform_indices = @transform_8, window_bounds = array<i64: 1, 1>}, {transform_indices = @transform_9, window_bounds = array<i64: 1, 256>}]} {
    %c0 = arith.constant 0 : index
    %c0_0 = arith.constant 0 : index
    %0 = vector.load %arg1[%c0, %c0_0] : memref<256x12xf32, #tpu.memory_space<vmem>>, vector<256x12xf32>
    %c0_1 = arith.constant 0 : index
    %c0_2 = arith.constant 0 : index
    %1 = vector.load %arg2[%c0_1, %c0_2] : memref<12x128xf32, #tpu.memory_space<vmem>>, vector<12x128xf32>
    %cst = arith.constant dense<0.000000e+00> : vector<256x128xf32>
    %2 = tpu.matmul %0, %1, %cst {dimension_numbers = #tpu.dot_dimension_numbers<[1], [0], [0], [1], [0, 0, 1, 1], [], []>} : vector<256x12xf32>, vector<12x128xf32>, vector<256x128xf32> -> vector<256x128xf32>
    %c0_3 = arith.constant 0 : index
    %c0_4 = arith.constant 0 : index
    %3 = vector.load %arg3[%c0_3, %c0_4] : memref<1x128xf32, #tpu.memory_space<vmem>>, vector<1x128xf32>
    %4 = vector.broadcast %3 : vector<1x128xf32> to vector<256x128xf32>
    %5 = arith.addf %2, %4 : vector<256x128xf32>
    %cst_5 = arith.constant 0.000000e+00 : f32
    %6 = vector.broadcast %cst_5 : f32 to vector<256x128xf32>
    %7 = arith.maximumf %5, %6 : vector<256x128xf32>
    %c0_6 = arith.constant 0 : index
    %c0_7 = arith.constant 0 : index
    %8 = vector.load %arg4[%c0_6, %c0_7] : memref<64x128xf32, #tpu.memory_space<vmem>>, vector<64x128xf32>
    %cst_8 = arith.constant dense<0.000000e+00> : vector<64x256xf32>
    %9 = tpu.matmul %8, %7, %cst_8 {dimension_numbers = #tpu.dot_dimension_numbers<[1], [1], [0], [0], [0, 0, 1, 0], [], []>} : vector<64x128xf32>, vector<256x128xf32>, vector<64x256xf32> -> vector<64x256xf32>
    %c0_9 = arith.constant 0 : index
    %c0_10 = arith.constant 0 : index
    %10 = vector.load %arg5[%c0_9, %c0_10] : memref<64x1xf32, #tpu.memory_space<vmem>>, vector<64x1xf32>
    %11 = vector.broadcast %10 : vector<64x1xf32> to vector<64x256xf32>
    %12 = arith.addf %9, %11 : vector<64x256xf32>
    %cst_11 = arith.constant 0.000000e+00 : f32
    %13 = vector.broadcast %cst_11 : f32 to vector<64x256xf32>
    %14 = arith.maximumf %12, %13 : vector<64x256xf32>
    %c0_12 = arith.constant 0 : index
    %c0_13 = arith.constant 0 : index
    %15 = vector.load %arg6[%c0_12, %c0_13] : memref<32x64xf32, #tpu.memory_space<vmem>>, vector<32x64xf32>
    %cst_14 = arith.constant dense<0.000000e+00> : vector<32x256xf32>
    %16 = tpu.matmul %15, %14, %cst_14 {dimension_numbers = #tpu.dot_dimension_numbers<[1], [0], [0], [1], [0, 0, 1, 1], [], []>} : vector<32x64xf32>, vector<64x256xf32>, vector<32x256xf32> -> vector<32x256xf32>
    %c0_15 = arith.constant 0 : index
    %c0_16 = arith.constant 0 : index
    %17 = vector.load %arg7[%c0_15, %c0_16] : memref<32x1xf32, #tpu.memory_space<vmem>>, vector<32x1xf32>
    %18 = vector.broadcast %17 : vector<32x1xf32> to vector<32x256xf32>
    %19 = arith.addf %16, %18 : vector<32x256xf32>
    %cst_17 = arith.constant 0.000000e+00 : f32
    %20 = vector.broadcast %cst_17 : f32 to vector<32x256xf32>
    %21 = arith.maximumf %19, %20 : vector<32x256xf32>
    %c0_18 = arith.constant 0 : index
    %c0_19 = arith.constant 0 : index
    %22 = vector.load %arg8[%c0_18, %c0_19] : memref<32x1xf32, #tpu.memory_space<vmem>>, vector<32x1xf32>
    %23 = vector.broadcast %22 : vector<32x1xf32> to vector<32x256xf32>
    %24 = arith.mulf %23, %21 : vector<32x256xf32>
    %cst_20 = arith.constant dense<0.000000e+00> : vector<256xf32>
    %25 = vector.multi_reduction <add>, %24, %cst_20 [0] : vector<32x256xf32> to vector<256xf32>
    %26 = vector.shape_cast %25 : vector<256xf32> to vector<1x256xf32>
    %c0_21 = arith.constant 0 : index
    %c0_22 = arith.constant 0 : index
    %27 = memref.load %arg9[%c0_21, %c0_22] : memref<1x1xf32, #tpu.memory_space<smem>>
    %28 = vector.broadcast %27 : f32 to vector<1x256xf32>
    %29 = arith.addf %26, %28 : vector<1x256xf32>
    %c0_23 = arith.constant 0 : index
    %c0_24 = arith.constant 0 : index
    %30 = vector.load %arg10[%c0_23, %c0_24] : memref<1x256xf32, #tpu.memory_space<vmem>>, vector<1x256xf32>
    tpu.vector_store %arg10[%c0_23, %c0_24], %29 {strides = array<i32>} : memref<1x256xf32, #tpu.memory_space<vmem>>, vector<1x256xf32>,
    return
  }
  func.func @transform_0(%arg0: i32) -> (i32, i32) {
    %c0_i32 = arith.constant 0 : i32
    %c0_i32_0 = arith.constant 0 : i32
    return %arg0, %c0_i32 : i32, i32
  }
  func.func @transform_1(%arg0: i32) -> (i32, i32) {
    %c0_i32 = arith.constant 0 : i32
    %c0_i32_0 = arith.constant 0 : i32
    %c0_i32_1 = arith.constant 0 : i32
    return %c0_i32, %c0_i32_0 : i32, i32
  }
  func.func @transform_2(%arg0: i32) -> (i32, i32) {
    %c0_i32 = arith.constant 0 : i32
    %c0_i32_0 = arith.constant 0 : i32
    %c0_i32_1 = arith.constant 0 : i32
    return %c0_i32, %c0_i32_0 : i32, i32
  }
  func.func @transform_3(%arg0: i32) -> (i32, i32) {
    %c0_i32 = arith.constant 0 : i32
    %c0_i32_0 = arith.constant 0 : i32
    %c0_i32_1 = arith.constant 0 : i32
    return %c0_i32, %c0_i32_0 : i32, i32
  }
  func.func @transform_4(%arg0: i32) -> (i32, i32) {
    %c0_i32 = arith.constant 0 : i32
    %c0_i32_0 = arith.constant 0 : i32
    %c0_i32_1 = arith.constant 0 : i32
    return %c0_i32, %c0_i32_0 : i32, i32
  }
  func.func @transform_5(%arg0: i32) -> (i32, i32) {
    %c0_i32 = arith.constant 0 : i32
    %c0_i32_0 = arith.constant 0 : i32
    %c0_i32_1 = arith.constant 0 : i32
    return %c0_i32, %c0_i32_0 : i32, i32
  }
  func.func @transform_6(%arg0: i32) -> (i32, i32) {
    %c0_i32 = arith.constant 0 : i32
    %c0_i32_0 = arith.constant 0 : i32
    %c0_i32_1 = arith.constant 0 : i32
    return %c0_i32, %c0_i32_0 : i32, i32
  }
  func.func @transform_7(%arg0: i32) -> (i32, i32) {
    %c0_i32 = arith.constant 0 : i32
    %c0_i32_0 = arith.constant 0 : i32
    %c0_i32_1 = arith.constant 0 : i32
    return %c0_i32, %c0_i32_0 : i32, i32
  }
  func.func @transform_8(%arg0: i32) -> (i32, i32) {
    %c0_i32 = arith.constant 0 : i32
    %c0_i32_0 = arith.constant 0 : i32
    %c0_i32_1 = arith.constant 0 : i32
    return %c0_i32, %c0_i32_0 : i32, i32
  }
  func.func @transform_9(%arg0: i32) -> (i32, i32) {
    %c0_i32 = arith.constant 0 : i32
    %c0_i32_0 = arith.constant 0 : i32
    return %c0_i32, %arg0 : i32, i32
  }
}

</mosaic_0001>

<bundles_post_ra>
// kernel: tpu_custom_call.1
= control target key start
LH: loop header
LB: loop body
LE: loop exit
PB: predicated region body
PF: predicated region fallthrough
CT: control target
= control target key end

     0   :  { %s1958_s0 = inlined_call_operand.vmem [shape: f32[300,12], index: 0, kind: input, shape index: {}]   ;;  %s1959_s1 = inlined_call_operand.vmem [shape: f32[12,128], index: 1, kind: input, shape index: {}]   ;;  %s1960_s2 = inlined_call_operand.vmem [shape: f32[1,128], index: 2, kind: input, shape index: {}]   ;;  %s1961_s3 = inlined_call_operand.vmem [shape: f32[64,128], index: 3, kind: input, shape index: {}]   ;;  %s1962_s4 = inlined_call_operand.vmem [shape: f32[64,1], index: 4, kind: input, shape index: {}]   ;;  %s1963_s5 = inlined_call_operand.vmem [shape: f32[32,64], index: 5, kind: input, shape index: {}]   ;;  %s1964_s6 = inlined_call_operand.vmem [shape: f32[32,1], index: 6, kind: input, shape index: {}]   ;;  %s1965_s7 = inlined_call_operand.vmem [shape: f32[32,1], index: 7, kind: input, shape index: {}]   ;;  %s1966_s8 = inlined_call_operand.<no memory space> [shape: f32[1,1], index: 8, kind: input, shape index: {}]   ;;  %s1967_s9 = inlined_call_operand.hbm [shape: f32[1,512], index: 9, kind: output, shape index: {}]  }
   0x1   :  { %14 = sst [smem:[#allocation2]] %s1966_s8 }
   0x2   :  { %15 = vsyncpa [#allocation4], 0 }
   0x3   :  { %17 = vsyncpa [#allocation4 + $0x1], 0  ;;  %s1634_s11 = smov 0   ;;  %s1636_s12 = smov 0  }
   0x4   :  { %s1638_s13 = smov 0   ;;  %s1640_s14 = smov 0  }
   0x5 LB: > { %s1227_s8 = sadd.s32 4294967295, %s1574_s14   ;;  %s1228_s15 = sadd.s32 4294967294, %s1574_s14   ;;  %s1574_s14 = sphi %s1640_s14, %s1973_s14   ;;  %s1570_s13 = sphi %s1638_s13, %s1972_s13   ;;  %s1566_s12 = sphi %s1636_s12, %s1971_s12   ;;  %s1562_s11 = sphi %s1634_s11, %s1970_s11  }
   0x6   : > { %s1657_s16 = sadd.s32 1, %s1574_s14   ;;  %s224_s17 = sadd.s32 1, %s1570_s13 }
   0x7   : > { %s221_s18 = ssub.s32 %s1574_s14, %s1657_s16  ;;  %p234_p0 = scmp.ne.s32.totalorder %s1570_s13, %s1566_s12 }
   0x8   : > { %p222_p1 = scmp.eq.s32.totalorder %s221_s18, 0  ;;  %p235_p2 = scmp.eq.s32.totalorder %s1227_s8, 1 }
   0x9   : > { %p240_p3 = scmp.ne.s32.totalorder %s1566_s12, %s1562_s11  ;;  %p241_p4 = scmp.eq.s32.totalorder %s1228_s15, 1 }
   0xa   : > { %s1667_s19 = scalar_select %p222_p1, %s1570_s13, %s224_s17  }
   0xb   : > { %p1669_p5 = por %p235_p2, %p234_p0  ;;  %p1673_p6 = por %p241_p4, %p240_p3 }
   0xc   : > { %p1231_p7 = scmp.ge.s32.totalorder %s1574_s14, 1  ;;  %p300_p8 = scmp.lt.s32.totalorder %s1574_s14, 3 }
   0xe   : > { %p301_p9 = pnand %p1231_p7, %p300_p8 }
   0xf   : > { %v387_v0 = vld [vmem:[%s1959_s1] sm:$0xff] (!%p301_p9)  ;;  %v388_v1 = vld [vmem:[%s1959_s1 + $0x8] sm:$0xf] (!%p301_p9)  ;;  %vm493_vm0 = vcmask (!%p301_p9), 1043456   ;;  %s1685_s26 = sshll.u32 (!%p301_p9), %s1227_s8, 5  ;;  %vm1576_vm1 = vmmov (!%p301_p9), 1  }
  0x10   : > { %304 = sbr.rel (%p301_p9) target bundleno = 862 (0x35e), region = 56  ;;  %v1413_v2 = vpack.c.bf16 (!%p301_p9), %v388_v1, %v387_v0  ;;  %vm1414_vm2 = vmpackc.low (!%p301_p9), %vm493_vm0, %vm1576_vm1  ;;  %p345_p10 = scmp.lt.s32.totalorder (!%p301_p9), %s1685_s26, 37  ;;  %vm396_vm3 = vcmask (!%p301_p9), 97280   ;;  %v1761_v35 = vld [vmem:[%s1961_s3] sm:$0xff] (!%p301_p9)  ;;  %v1577_v47 = vmov (!%p301_p9), 0   ;;  %v764_v48 = vld [vmem:[%s1962_s4 + $0x10] sm:$0xff] (!%p301_p9) }
  0x11   : > { %1345 = vmatprep.mubr.f32.mxu1 (!%p301_p9), %v1761_v35  ;;  %v1767_v36 = vld [vmem:[%s1960_s2] ss:$0 sm:$0xff] (!%p301_p9)  ;;  %1510 = vset.pattern.permute.xlu0 (!%p301_p9), %v1577_v47  ;;  %v763_v52 = vld [vmem:[%s1962_s4 + $0x8] sm:$0xff] (!%p301_p9)  ;;  %v765_v53 = vld [vmem:[%s1962_s4 + $0x18] sm:$0xff] (!%p301_p9)  ;;  %vm967_vm4 = vcmask (!%p301_p9), 523264   ;;  %s1127_s24 = sld [smem:[#allocation2]] (!%p301_p9)  ;;  %s1916_s8 = scalar_lea.hbm (!%p301_p9), %s1967_s9, %s1685_s26 }
  0x12   : > { %1415 = vmatprep.subr.msk.bf16.mxu0 (!%p301_p9), %vm1414_vm2, %v1413_v2  ;;  %v762_v44 = vld [vmem:[%s1962_s4] sm:$0xff] (!%p301_p9)  ;;  %1511 = vset.pattern.permute.xlu1 (!%p301_p9), %v1577_v47  ;;  %v767_v62 = vld [vmem:[%s1962_s4 + $0x28] sm:$0xff] (!%p301_p9)  ;;  %s337_s25 = sand.u32 (!%p301_p9), 1, %s1566_s12   ;;  %s1580_s18 = smov (!%p301_p9), [#allocation3]  }
  0x13   : > { %1418 = vmatpush3.bf16.msk.msra.mxu0 (!%p301_p9), %vm1414_vm2, %v1413_v2  ;;  %772 = vperm.xlu0 (!%p301_p9), %1510, %v762_v44   ;;  %v766_v61 = vld [vmem:[%s1962_s4 + $0x20] sm:$0xff] (!%p301_p9)  ;;  %v1079_v44 = vld [vmem:[%s1965_s7 + $0x10] sm:$0xff] (!%p301_p9)  ;;  %s1155_s15 = scalar_lea.sflag (!%p301_p9), [#allocation4], %s337_s25  ;;  %s1516_s22 = sshll.u32 (!%p301_p9), %s1580_s18, 4  ;;  %s1517_s22 = int_to_ptr.vmem [resolvable:$false] %s1516_s22 }
  0x14   : > { %782 = vperm.xlu1 (!%p301_p9), %1511, %v764_v48   ;;  %s1518_s23 = scalar_lea.vmem (!%p301_p9), %s1517_s22, 64 }
  0x17   : > { %s346_s27 = scalar_select %p345_p10, %s1685_s26, 37  ;;  %777 = vperm.xlu0 %1510, %v763_v52  }
  0x18   : > { %787 = vperm.xlu1 %1511, %v765_v53  }
  0x19   : > { %s1234_s28 = sshll.u32 %s346_s27, 3  ;;  %s1232_s27 = sshll.u32 %s337_s25, 1 }
  0x1a   : > { %s1692_s10 = scalar_lea.vmem %s1958_s0, %s1234_s28  ;;  %s339_s28 = scalar_lea.vmem [#allocation3], %s1232_s27 }
  0x1b   : > { %v355_v3 = vld [vmem:[%s1692_s10] sm:$0xff]  ;;  %v356_v4 = vld [vmem:[%s1692_s10 + $0x8] sm:$0xff]  ;;  %v357_v5 = vld [vmem:[%s1692_s10 + $0x10] sm:$0xff]  ;;  %792 = vperm.xlu0 %1510, %v766_v61   ;;  %s1169_s29 = sshll.u32 %s339_s28, 4  ;;  %s1918_s29 = int_to_ptr.vmem [resolvable:$true] %s1169_s29 }
  0x1c   : > { %1365 = vmatprep.mubr.msk.f32.mxu0 %vm396_vm3, %v355_v3  ;;  %v358_v6 = vld [vmem:[%s1692_s10 + $0x18] sm:$0xff]  ;;  %v359_v7 = vld [vmem:[%s1692_s10 + $0x20] sm:$0xff]  ;;  %v360_v8 = vld [vmem:[%s1692_s10 + $0x28] sm:$0xff]  ;;  %797 = vperm.xlu1 %1511, %v767_v62   ;;  %s1512_s17 = scalar_lea.vmem %s1918_s29, 32  ;;  %p1519_p0 = scmp.lt.s32.totalorder %s1918_s29, %s1517_s22 }
  0x1d   : > { %1366 = vmatmul.mubr.msk.f32.vlgmr.msra.gmra.mrb[0].mxu0 %vm396_vm3, %v356_v4  ;;  %v361_v9 = vld [vmem:[%s1692_s10 + $0x30] sm:$0xff]  ;;  %v362_v10 = vld [vmem:[%s1692_s10 + $0x38] sm:$0xff]  ;;  %v363_v11 = vld [vmem:[%s1692_s10 + $0x40] sm:$0xff]  ;;  %p1513_p11 = scmp.ne.s32.totalorder %s1918_s29, %s1512_s17  ;;  %p1520_p1 = scmp.lt.s32.totalorder %s1518_s23, %s1512_s17 }
  0x1e   : > { %1368 = vmatprep.mubr.msk.f32.mxu0 %vm396_vm3, %v357_v5  ;;  %v364_v12 = vld [vmem:[%s1692_s10 + $0x48] sm:$0xff]  ;;  %v365_v13 = vld [vmem:[%s1692_s10 + $0x50] sm:$0xff]  ;;  %v366_v14 = vld [vmem:[%s1692_s10 + $0x58] sm:$0xff] }
  0x1f   : > { %v367_v15 = vld [vmem:[%s1692_s10 + $0x60] sm:$0xff]  ;;  %v368_v16 = vld [vmem:[%s1692_s10 + $0x68] sm:$0xff]  ;;  %v369_v17 = vld [vmem:[%s1692_s10 + $0x70] sm:$0xff]  ;;  %p1514_p12 = pnand %p1513_p11, %p1669_p5  ;;  %p1521_p2 = por %p1520_p1, %p1519_p0 }
  0x20   : > { %v370_v18 = vld [vmem:[%s1692_s10 + $0x78] sm:$0xff]  ;;  %v371_v19 = vld [vmem:[%s1692_s10 + $0x80] sm:$0xff]  ;;  %v372_v20 = vld [vmem:[%s1692_s10 + $0x88] sm:$0xff] }
  0x21   : > { %1369 = vmatmul.mubr.msk.f32.gmra.mrb[2].mxu0 %vm396_vm3, %v358_v6  ;;  %v373_v21 = vld [vmem:[%s1692_s10 + $0x90] sm:$0xff]  ;;  %v374_v22 = vld [vmem:[%s1692_s10 + $0x98] sm:$0xff]  ;;  %v375_v23 = vld [vmem:[%s1692_s10 + $0xa0] sm:$0xff]  ;;  %p1515_p13 = pneg %p1514_p12 }
  0x22   : > { %1371 = vmatprep.mubr.msk.f32.mxu0 %vm396_vm3, %v359_v7  ;;  %v376_v24 = vld [vmem:[%s1692_s10 + $0xa8] sm:$0xff]  ;;  %v377_v25 = vld [vmem:[%s1692_s10 + $0xb0] sm:$0xff]  ;;  %v378_v26 = vld [vmem:[%s1692_s10 + $0xb8] sm:$0xff] }
  0x23   : > { %v379_v27 = vld [vmem:[%s1692_s10 + $0xc0] sm:$0xff]  ;;  %v380_v28 = vld [vmem:[%s1692_s10 + $0xc8] sm:$0xff]  ;;  %v381_v29 = vld [vmem:[%s1692_s10 + $0xd0] sm:$0xff]  ;;  %p1522_p3 = pnand %p1521_p2, %p1515_p13 }
  0x24   : > { %v382_v30 = vld [vmem:[%s1692_s10 + $0xd8] sm:$0xff]  ;;  %v383_v31 = vld [vmem:[%s1692_s10 + $0xe0] sm:$0xff]  ;;  %v384_v32 = vld [vmem:[%s1692_s10 + $0xe8] sm:$0xff] }
  0x25   : > { %1372 = vmatmul.mubr.msk.f32.gmra.mrb[4].mxu0 %vm396_vm3, %v360_v8  ;;  %v385_v33 = vld [vmem:[%s1692_s10 + $0xf0] sm:$0xff]  ;;  %v386_v34 = vld [vmem:[%s1692_s10 + $0xf8] sm:$0xff] }
  0x26   : > { %1374 = vmatprep.mubr.msk.f32.mxu0 %vm396_vm3, %v361_v9  ;;  %v768_v6 = vld [vmem:[%s1962_s4 + $0x30] sm:$0xff]  ;;  %v769_v7 = vld [vmem:[%s1962_s4 + $0x38] sm:$0xff] }
  0x27   : > { %802 = vperm.xlu0 %1510, %v768_v6   ;;  %807 = vperm.xlu1 %1511, %v769_v7  }
  0x29   : > { %1375 = vmatmul.mubr.msk.f32.gmra.mrb[6].mxu0 %vm396_vm3, %v362_v10 }
  0x2a   : > { %1377 = vmatprep.mubr.msk.f32.mxu0 %vm396_vm3, %v363_v11 }
  0x2d   : > { %1378 = vmatmul.mubr.msk.f32.gmra.mrb[8].mxu0 %vm396_vm3, %v364_v12 }
  0x2e   : > { %1380 = vmatprep.mubr.msk.f32.mxu0 %vm396_vm3, %v365_v13 }
  0x31   : > { %1381 = vmatmul.mubr.msk.f32.gmra.mrb[10].mxu0 %vm396_vm3, %v366_v14 }
  0x32   : > { %1383 = vmatprep.mubr.msk.f32.mxu0 %vm396_vm3, %v367_v15  ;;  %v943_v15 = vld [vmem:[%s1964_s6] sm:$0xff] }
  0x33   : > { %949 = vperm.xlu0 %1510, %v943_v15  }
  0x35   : > { %1384 = vmatmul.mubr.msk.f32.gmra.mrb[12].mxu0 %vm396_vm3, %v368_v16  ;;  %v944_v16 = vld [vmem:[%s1964_s6 + $0x8] sm:$0xff] }
  0x36   : > { %1386 = vmatprep.mubr.msk.f32.mxu0 %vm396_vm3, %v369_v17  ;;  %954 = vperm.xlu1 %1511, %v944_v16  }
  0x39   : > { %1387 = vmatmul.mubr.msk.f32.gmra.mrb[14].mxu0 %vm396_vm3, %v370_v18 }
  0x3a   : > { %1389 = vmatprep.mubr.msk.f32.mxu0 %vm396_vm3, %v371_v19 }
  0x3d   : > { %1390 = vmatmul.mubr.msk.f32.gmra.mrb[16].mxu0 %vm396_vm3, %v372_v20 }
  0x3e   : > { %1392 = vmatprep.mubr.msk.f32.mxu0 %vm396_vm3, %v373_v21 }
  0x41   : > { %1393 = vmatmul.mubr.msk.f32.gmra.mrb[18].mxu0 %vm396_vm3, %v374_v22 }
  0x42   : > { %1395 = vmatprep.mubr.msk.f32.mxu0 %vm396_vm3, %v375_v23 }
  0x45   : > { %1396 = vmatmul.mubr.msk.f32.gmra.mrb[20].mxu0 %vm396_vm3, %v376_v24  ;;  %v945_v24 = vld [vmem:[%s1964_s6 + $0x10] sm:$0xff] }
  0x46   : > { %1398 = vmatprep.mubr.msk.f32.mxu0 %vm396_vm3, %v377_v25  ;;  %v946_v25 = vld [vmem:[%s1964_s6 + $0x18] sm:$0xff]  ;;  %959 = vperm.xlu0 %1510, %v945_v24  }
  0x47   : > { %964 = vperm.xlu1 %1511, %v946_v25  }
  0x49   : > { %1399 = vmatmul.mubr.msk.f32.gmra.mrb[22].mxu0 %vm396_vm3, %v378_v26 }
  0x4a   : > { %1401 = vmatprep.mubr.msk.f32.mxu0 %vm396_vm3, %v379_v27 }
  0x4d   : > { %1402 = vmatmul.mubr.msk.f32.gmra.mrb[24].mxu0 %vm396_vm3, %v380_v28 }
  0x4e   : > { %1404 = vmatprep.mubr.msk.f32.mxu0 %vm396_vm3, %v381_v29 }
  0x51   : > { %1405 = vmatmul.mubr.msk.f32.gmra.mrb[26].mxu0 %vm396_vm3, %v382_v30 }
  0x52   : > { %1407 = vmatprep.mubr.msk.f32.mxu0 %vm396_vm3, %v383_v31 }
  0x55   : > { %1408 = vmatmul.mubr.msk.f32.gmra.mrb[28].mxu0 %vm396_vm3, %v384_v32 }
  0x56   : > { %1410 = vmatprep.mubr.msk.f32.mxu0 %vm396_vm3, %v385_v33  ;;  %v1077_v33 = vld [vmem:[%s1965_s7] sm:$0xff] }
  0x57   : > { %1083 = vperm.xlu0 %1510, %v1077_v33  }
  0x59   : > { %1411 = vmatmul.mubr.msk.f32.gmra.mrb[30].mxu0 %vm396_vm3, %v386_v34  ;;  %v1078_v34 = vld [vmem:[%s1965_s7 + $0x8] sm:$0xff] }
  0x5a   : > { %1088 = vperm.xlu1 %1511, %v1078_v34  }
  0x5b   : > { %1093 = vperm.xlu0 %1510, %v1079_v44  }
  0xf0   : > { %v1367_v37 = vpop.f32.mrb[0].mxu0 }
  0xf1   : > { %v569_v38 = vadd.f32 %v1367_v37, %v1767_v36  ;;  %v563_v39 = vpop.f32.mrb[1].mxu0 }
  0xf2   : > { %v564_v40 = vadd.f32 %v1767_v36, %v563_v39 }
  0xf3   : > { %v723_v41 = vmax.f32 %v569_v38, 0.0 }
  0xf4   : > { %v722_v42 = vmax.f32 %v564_v40, 0.0  ;;  %v1370_v43 = vpop.f32.mrb[2].mxu0 }
  0xf5   : > { %v579_v45 = vadd.f32 %v1370_v43, %v1767_v36  ;;  %v573_v46 = vpop.f32.mrb[3].mxu0 }
  0xf6   : > { %v574_v49 = vadd.f32 %v1767_v36, %v573_v46  ;;  %v1779_v50 = vpack.c.bf16 %v723_v41, %v722_v42 }
  0xf7   : > { %v725_v51 = vmax.f32 %v579_v45, 0.0  ;;  %v1080_v45 = vld [vmem:[%s1965_s7 + $0x18] sm:$0xff] }
  0xf8   : > { %v724_v54 = vmax.f32 %v574_v49, 0.0  ;;  %v1373_v55 = vpop.f32.mrb[4].mxu0  ;;  %1098 = vperm.xlu1 %1511, %v1080_v45  }
  0xf9   : > { %v589_v56 = vadd.f32 %v1373_v55, %v1767_v36  ;;  %v583_v57 = vpop.f32.mrb[5].mxu0 }
  0xfa   : > { %v1788_v58 = vpack.c.bf16 %v725_v51, %v724_v54  ;;  %v584_v59 = vadd.f32 %v1767_v36, %v583_v57 }
  0xfb   : > { %v727_v60 = vmax.f32 %v589_v56, 0.0 }
  0xfc   : > { %v726_v63 = vmax.f32 %v584_v59, 0.0  ;;  %v1376_v0 = vpop.f32.mrb[6].mxu0 }
  0xfd   : > { %v599_v1 = vadd.f32 %v1376_v0, %v1767_v36  ;;  %v593_v2 = vpop.f32.mrb[7].mxu0 }
  0xfe   : > { %v1798_v3 = vpack.c.bf16 %v727_v60, %v726_v63  ;;  %v594_v4 = vadd.f32 %v1767_v36, %v593_v2 }
  0xff   : > { %v729_v5 = vmax.f32 %v599_v1, 0.0 }
 0x100   : > { %v728_v8 = vmax.f32 %v594_v4, 0.0  ;;  %v1379_v9 = vpop.f32.mrb[8].mxu0 }
 0x101   : > { %v609_v10 = vadd.f32 %v1379_v9, %v1767_v36  ;;  %v603_v11 = vpop.f32.mrb[9].mxu0 }
 0x102   : > { %v1808_v12 = vpack.c.bf16 %v729_v5, %v728_v8  ;;  %v604_v13 = vadd.f32 %v1767_v36, %v603_v11 }
 0x103   : > { %v731_v14 = vmax.f32 %v609_v10, 0.0 }
 0x104   : > { %v730_v17 = vmax.f32 %v604_v13, 0.0  ;;  %v1382_v18 = vpop.f32.mrb[10].mxu0 }
 0x105   : > { %v619_v19 = vadd.f32 %v1382_v18, %v1767_v36  ;;  %v613_v20 = vpop.f32.mrb[11].mxu0 }
 0x106   : > { %v1818_v21 = vpack.c.bf16 %v731_v14, %v730_v17  ;;  %v614_v22 = vadd.f32 %v1767_v36, %v613_v20 }
 0x107   : > { %v733_v23 = vmax.f32 %v619_v19, 0.0 }
 0x108   : > { %v732_v26 = vmax.f32 %v614_v22, 0.0  ;;  %v1385_v27 = vpop.f32.mrb[12].mxu0 }
 0x109   : > { %v629_v28 = vadd.f32 %v1385_v27, %v1767_v36  ;;  %v623_v29 = vpop.f32.mrb[13].mxu0 }
 0x10a   : > { %v1828_v30 = vpack.c.bf16 %v733_v23, %v732_v26  ;;  %v624_v31 = vadd.f32 %v1767_v36, %v623_v29 }
 0x10b   : > { %v735_v32 = vmax.f32 %v629_v28, 0.0 }
 0x10c   : > { %v734_v37 = vmax.f32 %v624_v31, 0.0  ;;  %v1388_v38 = vpop.f32.mrb[14].mxu0 }
 0x10d   : > { %v639_v39 = vadd.f32 %v1388_v38, %v1767_v36  ;;  %v633_v40 = vpop.f32.mrb[15].mxu0 }
 0x10e   : > { %v1838_v41 = vpack.c.bf16 %v735_v32, %v734_v37  ;;  %v634_v42 = vadd.f32 %v1767_v36, %v633_v40 }
 0x10f   : > { %v737_v43 = vmax.f32 %v639_v39, 0.0 }
 0x110   : > { %v736_v46 = vmax.f32 %v634_v42, 0.0  ;;  %v1391_v47 = vpop.f32.mrb[16].mxu0 }
 0x111   : > { %v649_v48 = vadd.f32 %v1391_v47, %v1767_v36  ;;  %v643_v49 = vpop.f32.mrb[17].mxu0  ;;  %v1578_v47 = vmov 0.0  }
 0x112   : > { %v1848_v51 = vpack.c.bf16 %v737_v43, %v736_v46  ;;  %v644_v52 = vadd.f32 %v1767_v36, %v643_v49  ;;  %v761_v46 = vld [vmem:[%s1961_s3 + $0x38] sm:$0xff]  ;;  %1044 = vmatprep.mubr.f32.mxu0 %v1578_v47 }
 0x113   : > { %v739_v53 = vmax.f32 %v649_v48, 0.0  ;;  %v773_v48 = vpop.permute.xlu0 %772 }
 0x114   : > { %v738_v54 = vmax.f32 %v644_v52, 0.0  ;;  %v1394_v55 = vpop.f32.mrb[18].mxu0 }
 0x115   : > { %v659_v56 = vadd.f32 %v1394_v55, %v1767_v36  ;;  %v653_v57 = vpop.f32.mrb[19].mxu0 }
 0x116   : > { %v654_v59 = vadd.f32 %v1767_v36, %v653_v57  ;;  %v1419_v60 = vpack.c.bf16 %v739_v53, %v738_v54 }
 0x117   : > { %v741_v61 = vmax.f32 %v659_v56, 0.0  ;;  %v778_v53 = vpop.permute.xlu0 %777 }
 0x118   : > { %v740_v62 = vmax.f32 %v654_v59, 0.0  ;;  %1420 = vmatprep.subr.bf16.mxu1 %v1419_v60  ;;  %v1397_v63 = vpop.f32.mrb[20].mxu0  ;;  %v783_v59 = vpop.permute.xlu1 %782 }
 0x119   : > { %1422 = vmatpush3.bf16.xpose.msra.mxu1 %v1779_v50  ;;  %v669_v0 = vadd.f32 %v1397_v63, %v1767_v36  ;;  %v663_v1 = vpop.f32.mrb[21].mxu0 }
 0x11a   : > { %v1423_v2 = vpack.c.bf16 %v741_v61, %v740_v62  ;;  %v664_v4 = vadd.f32 %v1767_v36, %v663_v1 }
 0x11b   : > { %v743_v5 = vmax.f32 %v669_v0, 0.0 }
 0x11c   : > { %1424 = vmatprep.subr.bf16.mxu1 %v1423_v2  ;;  %v742_v6 = vmax.f32 %v664_v4, 0.0  ;;  %v1400_v7 = vpop.f32.mrb[22].mxu0 }
 0x11d   : > { %v679_v8 = vadd.f32 %v1400_v7, %v1767_v36  ;;  %v673_v9 = vpop.f32.mrb[23].mxu0  ;;  %v788_v7 = vpop.permute.xlu1 %787 }
 0x11e   : > { %v1427_v10 = vpack.c.bf16 %v743_v5, %v742_v6  ;;  %v674_v11 = vadd.f32 %v1767_v36, %v673_v9 }
 0x11f   : > { %v745_v13 = vmax.f32 %v679_v8, 0.0 }
 0x120   : > { %v744_v14 = vmax.f32 %v674_v11, 0.0  ;;  %v1403_v15 = vpop.f32.mrb[24].mxu0 }
 0x121   : > { %1426 = vmatpush3.bf16.xpose.msra.mxu1 %v1788_v58  ;;  %v689_v50 = vadd.f32 %v1403_v15, %v1767_v36  ;;  %v683_v16 = vpop.f32.mrb[25].mxu0 }
 0x122   : > { %1428 = vmatprep.subr.bf16.mxu1 %v1427_v10  ;;  %v1431_v17 = vpack.c.bf16 %v745_v13, %v744_v14  ;;  %v684_v18 = vadd.f32 %v1767_v36, %v683_v16 }
 0x123   : > { %v747_v19 = vmax.f32 %v689_v50, 0.0 }
 0x124   : > { %v746_v20 = vmax.f32 %v684_v18, 0.0  ;;  %v1406_v22 = vpop.f32.mrb[26].mxu0 }
 0x125   : > { %v699_v23 = vadd.f32 %v1406_v22, %v1767_v36  ;;  %v693_v24 = vpop.f32.mrb[27].mxu0 }
 0x126   : > { %v1435_v25 = vpack.c.bf16 %v747_v19, %v746_v20  ;;  %v694_v26 = vadd.f32 %v1767_v36, %v693_v24  ;;  %v793_v20 = vpop.permute.xlu0 %792  ;;  %v798_v24 = vpop.permute.xlu1 %797 }
 0x127   : > { %v749_v27 = vmax.f32 %v699_v23, 0.0 }
 0x128   : > { %v748_v28 = vmax.f32 %v694_v26, 0.0  ;;  %v1409_v29 = vpop.f32.mrb[28].mxu0 }
 0x129   : > { %1430 = vmatpush3.bf16.xpose.msra.mxu1 %v1798_v3  ;;  %v709_v58 = vadd.f32 %v1409_v29, %v1767_v36  ;;  %v703_v31 = vpop.f32.mrb[29].mxu0 }
 0x12a   : > { %1432 = vmatprep.subr.bf16.mxu1 %v1431_v17  ;;  %v1439_v32 = vpack.c.bf16 %v749_v27, %v748_v28  ;;  %v704_v33 = vadd.f32 %v1767_v36, %v703_v31 }
 0x12b   : > { %v751_v34 = vmax.f32 %v709_v58, 0.0 }
 0x12c   : > { %v750_v37 = vmax.f32 %v704_v33, 0.0  ;;  %v1412_v38 = vpop.f32.mrb[30].mxu0 }
 0x12d   : > { %v719_v39 = vadd.f32 %v1412_v38, %v1767_v36  ;;  %v713_v40 = vpop.f32.mrb[31].mxu0 }
 0x12e   : > { %v1443_v42 = vpack.c.bf16 %v751_v34, %v750_v37  ;;  %v714_v43 = vadd.f32 %v1767_v36, %v713_v40  ;;  %v755_v36 = vld [vmem:[%s1961_s3 + $0x8] sm:$0xff] }
 0x12f   : > { %v753_v44 = vmax.f32 %v719_v39, 0.0  ;;  %v803_v39 = vpop.permute.xlu0 %802 }
 0x130   : > { %v752_v45 = vmax.f32 %v714_v43, 0.0  ;;  %v808_v43 = vpop.permute.xlu1 %807 }
 0x131   : > { %1434 = vmatpush3.bf16.xpose.msra.mxu1 %v1808_v12  ;;  %v756_v12 = vld [vmem:[%s1961_s3 + $0x10] sm:$0xff] }
 0x132   : > { %1436 = vmatprep.subr.bf16.mxu1 %v1435_v25  ;;  %v1447_v3 = vpack.c.bf16 %v753_v44, %v752_v45 }
 0x139   : > { %1438 = vmatpush3.bf16.xpose.msra.mxu1 %v1818_v21  ;;  %v757_v21 = vld [vmem:[%s1961_s3 + $0x18] sm:$0xff] }
 0x13a   : > { %1440 = vmatprep.subr.bf16.mxu1 %v1439_v32 }
 0x141   : > { %1442 = vmatpush3.bf16.xpose.msra.mxu1 %v1828_v30  ;;  %v758_v30 = vld [vmem:[%s1961_s3 + $0x20] sm:$0xff] }
 0x142   : > { %1444 = vmatprep.subr.bf16.mxu1 %v1443_v42 }
 0x149   : > { %1446 = vmatpush3.bf16.xpose.msra.mxu1 %v1838_v41  ;;  %v760_v41 = vld [vmem:[%s1961_s3 + $0x30] sm:$0xff] }
 0x14a   : > { %1448 = vmatprep.subr.bf16.mxu1 %v1447_v3 }
 0x151   : > { %1450 = vmatpush3.bf16.xpose.msra.mxu1 %v1848_v51 }
 0x158   : > { %1346 = vmatmul.mubr.f32.vlgmr.msra.gmra.mrb[0].mxu1 %v1761_v35  ;;  %v759_v35 = vld [vmem:[%s1961_s3 + $0x28] sm:$0xff] }
 0x159   : > { %1347 = vmatprep.mubr.f32.mxu1 %v755_v36 }
 0x15c   : > { %1348 = vmatmul.mubr.f32.gmra.mrb[2].mxu1 %v755_v36 }
 0x15d   : > { %1349 = vmatprep.mubr.f32.mxu1 %v756_v12 }
 0x160   : > { %1350 = vmatmul.mubr.f32.gmra.mrb[4].mxu1 %v756_v12 }
 0x161   : > { %1351 = vmatprep.mubr.f32.mxu1 %v757_v21 }
 0x164   : > { %1352 = vmatmul.mubr.f32.gmra.mrb[6].mxu1 %v757_v21 }
 0x165   : > { %1353 = vmatprep.mubr.f32.mxu1 %v758_v30 }
 0x168   : > { %1354 = vmatmul.mubr.f32.gmra.mrb[8].mxu1 %v758_v30 }
 0x169   : > { %1355 = vmatprep.mubr.f32.mxu1 %v759_v35 }
 0x16c   : > { %1356 = vmatmul.mubr.f32.gmra.mrb[10].mxu1 %v759_v35 }
 0x16d   : > { %1357 = vmatprep.mubr.f32.mxu1 %v760_v41 }
 0x170   : > { %1358 = vmatmul.mubr.f32.gmra.mrb[12].mxu1 %v760_v41 }
 0x171   : > { %1359 = vmatprep.mubr.f32.mxu1 %v761_v46 }
 0x174   : > { %1360 = vmatmul.mubr.f32.gmra.mrb[14].mxu1 %v761_v46 }
 0x22b   : > { %v876_v49 = vpop.f32.mrb[0].mxu1 }
 0x22c   : > { %v878_v51 = vpop.f32.mrb[1].mxu1  ;;  %v877_v52 = vadd.f32 %v876_v49, %v773_v48  ;;  %v939_v49 = vld [vmem:[%s1963_s5] sm:$0xff] }
 0x22d   : > { %v879_v54 = vadd.f32 %v878_v51, %v773_v48  ;;  %v940_v51 = vld [vmem:[%s1963_s5 + $0x8] sm:$0xff] }
 0x22e   : > { %v923_v61 = vmax.f32 %v877_v52, 0.0  ;;  %v941_v52 = vld [vmem:[%s1963_s5 + $0x10] sm:$0xff] }
 0x22f   : > { %v882_v55 = vpop.f32.mrb[2].mxu1  ;;  %v924_v63 = vmax.f32 %v879_v54, 0.0  ;;  %v950_v54 = vpop.permute.xlu0 %949 }
 0x230   : > { %v883_v56 = vadd.f32 %v882_v55, %v778_v53  ;;  %v884_v57 = vpop.f32.mrb[3].mxu1  ;;  %v955_v55 = vpop.permute.xlu1 %954 }
 0x231   : > { %v885_v60 = vadd.f32 %v884_v57, %v778_v53  ;;  %v942_v53 = vld [vmem:[%s1963_s5 + $0x18] sm:$0xff] }
 0x232   : > { %v925_v62 = vmax.f32 %v883_v56, 0.0 }
 0x233   : > { %v926_v0 = vmax.f32 %v885_v60, 0.0  ;;  %v888_v1 = vpop.f32.mrb[4].mxu1  ;;  %v960_v56 = vpop.permute.xlu0 %959 }
 0x234   : > { %v1453_v2 = vpack.c.bf16 %v925_v62, %v923_v61  ;;  %v890_v4 = vpop.f32.mrb[5].mxu1  ;;  %v889_v6 = vadd.f32 %v888_v1, %v783_v59  ;;  %v965_v61 = vpop.permute.xlu1 %964 }
 0x235   : > { %v1451_v5 = vpack.c.bf16 %v926_v0, %v924_v63  ;;  %v891_v8 = vadd.f32 %v890_v4, %v783_v59 }
 0x236   : > { %v927_v14 = vmax.f32 %v889_v6, 0.0 }
 0x237   : > { %1452 = vmatprep.subr.bf16.mxu0 %v1451_v5  ;;  %v894_v9 = vpop.f32.mrb[6].mxu1  ;;  %v928_v50 = vmax.f32 %v891_v8, 0.0  ;;  %v1084_v4 = vpop.permute.xlu0 %1083 }
 0x238   : > { %1454 = vmatpush1.bf16.msra.mxu0 %v1453_v2  ;;  %v895_v10 = vadd.f32 %v894_v9, %v788_v7  ;;  %v896_v11 = vpop.f32.mrb[7].mxu1 }
 0x239   : > { %v897_v13 = vadd.f32 %v896_v11, %v788_v7  ;;  %v1089_v7 = vpop.permute.xlu1 %1088 }
 0x23a   : > { %v929_v15 = vmax.f32 %v895_v10, 0.0 }
 0x23b   : > { %v930_v16 = vmax.f32 %v897_v13, 0.0  ;;  %v900_v17 = vpop.f32.mrb[8].mxu1 }
 0x23c   : > { %v1457_v18 = vpack.c.bf16 %v929_v15, %v927_v14  ;;  %v902_v19 = vpop.f32.mrb[9].mxu1  ;;  %v901_v23 = vadd.f32 %v900_v17, %v793_v20 }
 0x23d   : > { %v1455_v22 = vpack.c.bf16 %v930_v16, %v928_v50  ;;  %v903_v25 = vadd.f32 %v902_v19, %v793_v20  ;;  %v1094_v19 = vpop.permute.xlu0 %1093 }
 0x23e   : > { %v931_v58 = vmax.f32 %v901_v23, 0.0 }
 0x23f   : > { %v906_v26 = vpop.f32.mrb[10].mxu1  ;;  %1456 = vmatprep.subr.bf16.mxu0 %v1455_v22  ;;  %v932_v32 = vmax.f32 %v903_v25, 0.0 }
 0x240   : > { %v907_v27 = vadd.f32 %v906_v26, %v798_v24  ;;  %v908_v28 = vpop.f32.mrb[11].mxu1  ;;  %1458 = vmatpush1.bf16.msra.mxu0 %v1457_v18 }
 0x241   : > { %v909_v29 = vadd.f32 %v908_v28, %v798_v24 }
 0x242   : > { %v933_v31 = vmax.f32 %v907_v27, 0.0 }
 0x243   : > { %v934_v33 = vmax.f32 %v909_v29, 0.0  ;;  %v912_v34 = vpop.f32.mrb[12].mxu1 }
 0x244   : > { %v1461_v37 = vpack.c.bf16 %v933_v31, %v931_v58  ;;  %v914_v38 = vpop.f32.mrb[13].mxu1  ;;  %v913_v42 = vadd.f32 %v912_v34, %v803_v39  ;;  %v1099_v31 = vpop.permute.xlu1 %1098 }
 0x245   : > { %v1459_v40 = vpack.c.bf16 %v934_v33, %v932_v32  ;;  %v915_v44 = vadd.f32 %v914_v38, %v803_v39 }
 0x246   : > { %v935_v21 = vmax.f32 %v913_v42, 0.0 }
 0x247   : > { %v918_v45 = vpop.f32.mrb[14].mxu1  ;;  %1460 = vmatprep.subr.bf16.mxu0 %v1459_v40  ;;  %v936_v35 = vmax.f32 %v915_v44, 0.0 }
 0x248   : > { %v919_v3 = vadd.f32 %v918_v45, %v808_v43  ;;  %v920_v36 = vpop.f32.mrb[15].mxu1  ;;  %1462 = vmatpush1.bf16.msra.mxu0 %v1461_v37 }
 0x249   : > { %v921_v12 = vadd.f32 %v920_v36, %v808_v43  ;;  %v1579_v36 = vmov 1966171168  }
 0x24a   : > { %v937_v30 = vmax.f32 %v919_v3, 0.0 }
 0x24b   : > { %v938_v41 = vmax.f32 %v921_v12, 0.0  ;;  %v1135_v12 = vunpack.c.l.s4 %v1579_v36 }
 0x24c   : > { %v1465_v46 = vpack.c.bf16 %v937_v30, %v935_v21  ;;  %v1137_v21 = vlaneseq }
 0x24d   : > { %v1463_v48 = vpack.c.bf16 %v938_v41, %v936_v35 }
 0x24e   : > { %vm1151_vm5 = vcmp.lt.s32.totalorder %v1137_v21, 256 }
 0x24f   : > { %1464 = vmatprep.subr.bf16.mxu0 %v1463_v48 }
 0x250   : > { %1466 = vmatpush1.bf16.msra.mxu0 %v1465_v46  ;;  %v1128_v46 = vstv %s1127_s24 }
 0x253   : > { %1269 = vmatmul.mubr.msk.f32.vlgmr.msra.gmra.mrb[32].mxu0 %vm967_vm4, %v939_v49  ;;  %v1136_v49 = vunpack.c.0.s8 %v1135_v12 }
 0x254   : > { %1050 = vmatprep.mubr.f32.mxu0 %v1578_v47 }
 0x257   : > { %1270 = vmatmul.mubr.msk.f32.gmra.mrb[34].mxu0 %vm967_vm4, %v940_v51  ;;  %v1138_v51 = vshrl.u32 %v1137_v21, 7 }
 0x258   : > { %1056 = vmatprep.mubr.f32.mxu0 %v1578_v47 }
 0x25b   : > { %1271 = vmatmul.mubr.msk.f32.gmra.mrb[36].mxu0 %vm967_vm4, %v941_v52 }
 0x25c   : > { %1062 = vmatprep.mubr.f32.mxu0 %v1578_v47 }
 0x25f   : > { %1272 = vmatmul.mubr.msk.f32.gmra.mrb[38].mxu0 %vm967_vm4, %v942_v53 }
 0x326   : > { %v1046_v57 = vpop.f32.mrb[32].mxu0 }
 0x327   : > { %v1047_v59 = vadd.f32 %v1046_v57, %v950_v54  ;;  %v1048_v60 = vpop.f32.mrb[33].mxu0 }
 0x328   : > { %v1049_v62 = vadd.f32 %v1048_v60, %v950_v54 }
 0x329   : > { %v1069_v0 = vmax.f32 %v1047_v59, 0.0 }
 0x32a   : > { %v1052_v63 = vpop.f32.mrb[34].mxu0  ;;  %v1070_v5 = vmax.f32 %v1049_v62, 0.0 }
 0x32b   : > { %v1053_v1 = vadd.f32 %v1052_v63, %v955_v55  ;;  %v1054_v2 = vpop.f32.mrb[35].mxu0  ;;  %v1101_v10 = vmul.f32 %v1084_v4, %v1069_v0 }
 0x32c   : > { %v1055_v47 = vadd.f32 %v1054_v2, %v955_v55  ;;  %v1102_v15 = vmul.f32 %v1084_v4, %v1070_v5 }
 0x32d   : > { %v1071_v6 = vmax.f32 %v1053_v1, 0.0 }
 0x32e   : > { %v1072_v8 = vmax.f32 %v1055_v47, 0.0  ;;  %v1058_v9 = vpop.f32.mrb[36].mxu0 }
 0x32f   : > { %v1103_v11 = vmul.f32 %v1089_v7, %v1071_v6  ;;  %v1059_v13 = vadd.f32 %v1058_v9, %v960_v56  ;;  %v1060_v14 = vpop.f32.mrb[37].mxu0 }
 0x330   : > { %v1104_v50 = vmul.f32 %v1089_v7, %v1072_v8  ;;  %v1061_v16 = vadd.f32 %v1060_v14, %v960_v56  ;;  %v1139_v56 = vsub.s32 %v1136_v49, %v1138_v51 }
 0x331   : > { %v1109_v17 = vadd.f32 %v1103_v11, %v1101_v10  ;;  %v1073_v18 = vmax.f32 %v1059_v13, 0.0 }
 0x332   : > { %v1118_v20 = vadd.f32 %v1104_v50, %v1102_v15  ;;  %v1074_v22 = vmax.f32 %v1061_v16, 0.0  ;;  %v1064_v23 = vpop.f32.mrb[38].mxu0 }
 0x333   : > { %v1105_v24 = vmul.f32 %v1094_v19, %v1073_v18  ;;  %v1065_v25 = vadd.f32 %v1064_v23, %v965_v61  ;;  %v1066_v26 = vpop.f32.mrb[39].mxu0 }
 0x334   : > { %v1106_v27 = vmul.f32 %v1094_v19, %v1074_v22  ;;  %v1067_v28 = vadd.f32 %v1066_v26, %v965_v61 }
 0x335   : > { %v1110_v29 = vadd.f32 %v1109_v17, %v1105_v24  ;;  %v1075_v58 = vmax.f32 %v1065_v25, 0.0 }
 0x336   : > { %v1119_v32 = vadd.f32 %v1118_v20, %v1106_v27  ;;  %v1076_v33 = vmax.f32 %v1067_v28, 0.0 }
 0x337   : > { %v1107_v34 = vmul.f32 %v1099_v31, %v1075_v58 }
 0x338   : > { %v1108_v37 = vmul.f32 %v1099_v31, %v1076_v33 }
 0x339   : > { %v1111_v38 = vadd.f32 %v1110_v29, %v1107_v34 }
 0x33a   : > { %v1120_v39 = vadd.f32 %v1119_v32, %v1108_v37 }
 0x33b   : > { %v1112_v40 = vrot.slane %v1111_v38, 4 }
 0x33c   : > { %v1121_v42 = vrot.slane %v1120_v39, 4 }
 0x33d   : > { %v1113_v43 = vadd.f32 %v1112_v40, %v1111_v38 }
 0x33e   : > { %v1122_v44 = vadd.f32 %v1121_v42, %v1120_v39 }
 0x33f   : > { %v1114_v45 = vrot.slane %v1113_v43, 2 }
 0x340   : > { %v1123_v3 = vrot.slane %v1122_v44, 2 }
 0x341   : > { %v1115_v30 = vadd.f32 %v1114_v45, %v1113_v43 }
 0x342   : > { %v1124_v35 = vadd.f32 %v1123_v3, %v1122_v44 }
 0x343   : > { %v1116_v41 = vrot.slane %v1115_v30, 1 }
 0x344   : > { %v1125_v48 = vrot.slane %v1124_v35, 1 }
 0x345   : > { %v1117_v52 = vadd.f32 %v1116_v41, %v1115_v30 }
 0x346   : > { %v1126_v53 = vadd.f32 %v1125_v48, %v1124_v35 }
 0x347   : > { %v1129_v54 = vadd.f32 %v1128_v46, %v1117_v52 }
 0x348   : > { %v1130_v55 = vadd.f32 %v1128_v46, %v1126_v53 }
 0x34a   : > { %v1133_v57 = vcombine.low %v1129_v54, %v1130_v55 }
 0x34c   : > { %v1140_v59 = vrot.slane %v1133_v57, %v1139_v56 }
 0x34e   : > { %v1147_v60 = vrot.slane %v1140_v59, %v1139_v56 }
 0x350   : > { %1153 = vst.msk [vmem:[%s339_s28] sm:$0x3] %vm1151_vm5, %v1147_v60 }
 0x351   : > { %1525 = shalt.err (!%p1522_p3)
}
 0x352   : > { %s1526_s26 = scalar_lea.hbm %s1916_s8, 32  ;;  %s1530_s27 = scalar_lea.hbm %s1967_s9, 64 }
 0x353   : > { %p1527_p4 = scmp.ne.s32.totalorder %s1916_s8, %s1526_s26  ;;  %p1531_p9 = scmp.lt.u32.totalorder %s1916_s8, %s1967_s9 }
 0x354   : > { %p1532_p10 = scmp.lt.u32.totalorder %s1530_s27, %s1526_s26  ;;  %p1534_p12 = scmp.lt.u32.totalorder %s1526_s26, %s1916_s8 }
 0x355   : > { %p1528_p7 = pnand %p1527_p4, %p1669_p5 }
 0x356   : > { %p1533_p11 = por %p1532_p10, %p1531_p9 }
 0x357   : > { %p1529_p8 = pneg %p1528_p7 }
 0x358   : > { %p1535_p13 = por %p1534_p12, %p1533_p11 }
 0x35a   : > { %p1536_p0 = pnand %p1535_p13, %p1529_p8 }
 0x35c   : > { %1539 = shalt.err (!%p1536_p0)
}
 0x35d   : > { %1467 = dma.vmem_to_hbm [thread:$0]  (%p1669_p5), %s1918_s29, 32, %s1916_s8, %s1155_s15  }
 0x35e PF: > { %p1473_p1 = scmp.ge.s32.totalorder %s1574_s14, 2  ;;  %s1181_s10 = sand.u32 1, %s1562_s11  }
 0x35f   : > { %s1182_s17 = scalar_lea.sflag [#allocation4], %s1181_s10 }
 0x360   : > { %p1470_p2 = pnand %p1473_p1, %p1673_p6 }
 0x362   : > { %1557 = dma.done.wait (!%p1470_p2), %s1182_s17, 32  }
 0x363   : > { %1559 = vsyncadd (!%p1470_p2), %s1182_s17, 4294967264  ;;  %p20_p3 = scmp.ge.s32.totalorder %s1657_s16, 4   ;;  %s1970_s11 = smov %s1566_s12 }
 0x364   : > { %s1971_s12 = smov %s1570_s13  ;;  %s1972_s13 = smov %s1667_s19 }
 0x365   : > { %s1973_s14 = smov %s1657_s16  ;;  %22 = sbr.rel (!%p20_p3) target bundleno = 5 (0x5), region = 91 }
 0x36c   :  { %1187 = vsyncpa [#allocation4], 1 }
 0x36d   :  { %1189 = vsyncpa [#allocation4 + $0x1], 1 }

</bundles_post_ra>
